<compile_context>
chip_gen: v7x
topology: tpu7x:2x2x1
jax: 0.10.0
libtpu: 0.0.40
codegen_flags: <defaults>
</compile_context>

<pallas_src>
import functools

import jax
import jax.numpy as jnp
import numpy as np
from jax.experimental import pallas as pl
from jax.experimental.pallas import tpu as pltpu


# ---------------------------------------------------------------------------
# Shared in-kernel helper: build the (9*C, H*W) bf16 im2col matrix from a
# doubled (C, 2*H*W) f32 tap buffer using lane-shifted slices + boundary masks.
# ---------------------------------------------------------------------------
def _im2col_taps(xx_ref, coords_ref, col_ref, H, W, C):
    HW = H * W
    py = coords_ref[0:1, :]          # (1, HW) int32: row index of each flat pixel
    px = coords_ref[1:2, :]          # (1, HW) int32: col index of each flat pixel
    t = 0
    for dy in (-1, 0, 1):
        for dx in (-1, 0, 1):
            k = (dy * W + dx) % HW                       # static lane shift
            tap = xx_ref[:, k:k + HW]                    # (C, HW) f32, wrapped shift
            ok = ((py + dy >= 0) & (py + dy < H) &
                  (px + dx >= 0) & (px + dx < W))        # zero-padding mask
            col_ref[t * C:(t + 1) * C, :] = (
                jnp.where(ok, tap, 0.0).astype(jnp.bfloat16))
            t += 1


# ---------------------------------------------------------------------------
# Kernel 1: 3x3 conv (single MXU dot, result lane-dense on H*W) + BN1 partials.
# ---------------------------------------------------------------------------
def conv3x3_kernel(x_ref, coords_ref, w_ref, y_ref, st_ref, xx_ref, col_ref, *,
                   H, W, Cin):
    HW = H * W
    xf = x_ref[0]                                        # (Cin, HW) f32
    xx_ref[:, 0:HW] = xf
    xx_ref[:, HW:2 * HW] = xf                            # doubled for wrapped taps
    _im2col_taps(xx_ref, coords_ref, col_ref, H, W, Cin)
    acc = jnp.dot(w_ref[...], col_ref[...],
                  preferred_element_type=jnp.float32)    # (Cout, HW) f32
    y_ref[0] = acc
    st_ref[0, :, 0:1] = jnp.sum(acc, axis=1, keepdims=True)
    st_ref[0, :, 1:2] = jnp.sum(acc * acc, axis=1, keepdims=True)


# ---------------------------------------------------------------------------
# Kernel 2: fused [BN1+ReLU of conv1 output] + F.pad + channel concat with x2
#           + 3x3 conv + BN2 partial stats.
# ---------------------------------------------------------------------------
def conv3x3_cat_kernel(y1_ref, bn1_ref, x2_ref, coords_ref, w_ref,
                       y_ref, st_ref, cc_ref, col_ref, *,
                       H1, W1, H2, W2, Cin, top, left):
    HW1 = H1 * W1
    HW2 = H2 * W2
    C2 = 2 * Cin

    # BN1 (pre-folded scale/shift) + ReLU on the raw conv1 output (one pass).
    a1 = jnp.maximum(y1_ref[0] * bn1_ref[:, 0:1] + bn1_ref[:, 1:2], 0.0)  # (Cin, HW1)

    # Channel concat [x2, pad(a1)] straight into the doubled tap buffer.
    cc_ref[0:Cin, 0:HW2] = x2_ref[0]
    # Zero only the x1-branch frame (the F.pad zeros); x2 half is written once.
    cc_ref[Cin:C2, 0:HW2] = jnp.zeros((Cin, HW2), jnp.float32)
    for r in range(H1):                                  # F.pad row scatter
        dst = (top + r) * W2 + left
        cc_ref[Cin:C2, dst:dst + W1] = a1[:, r * W1:(r + 1) * W1]
    cc_ref[:, HW2:2 * HW2] = cc_ref[:, 0:HW2]            # duplicate for wrapped taps

    _im2col_taps(cc_ref, coords_ref, col_ref, H2, W2, C2)
    acc = jnp.dot(w_ref[...], col_ref[...],
                  preferred_element_type=jnp.float32)    # (Cout, HW2) f32
    y_ref[0] = acc
    st_ref[0, :, 0:1] = jnp.sum(acc, axis=1, keepdims=True)
    st_ref[0, :, 1:2] = jnp.sum(acc * acc, axis=1, keepdims=True)


# ---------------------------------------------------------------------------
# Kernel 3: fused [BN2+ReLU] + ConvTranspose2d(k=2, s=2, padding=2, bias).
# Emits a lane-dense (4*Cup, H2*W2) slab; rows ordered ((ki*2+kj)*Cup + oc).
# ---------------------------------------------------------------------------
def upconv2x2_kernel(y2_ref, bn2_ref, wt_ref, b_ref, o_ref):
    a = jnp.maximum(y2_ref[0] * bn2_ref[:, 0:1] + bn2_ref[:, 1:2], 0.0)  # (C, HW2)
    z = jnp.dot(wt_ref[...], a.astype(jnp.bfloat16),
                preferred_element_type=jnp.float32)                      # (4*Cup, HW2)
    o_ref[0] = z + b_ref[...]                                            # per-row bias


# ---------------------------------------------------------------------------
# pallas_call wrappers
# ---------------------------------------------------------------------------
def _cparams():
    # Generation-aware VMEM budget (v7x: 64 MiB physical -> ~48 MiB; v5e/v6e:
    # 128 MiB -> up to 96 MiB).  Conservative fallback if the query is absent.
    try:
        phys = pltpu.get_tpu_info().vmem_capacity_bytes
        limit = int(min(phys * 3 // 4, 96 * 1024 * 1024))
        limit = max(limit, 32 * 1024 * 1024)
    except Exception:
        limit = 32 * 1024 * 1024
    return pltpu.CompilerParams(dimension_semantics=("parallel",),
                                vmem_limit_bytes=limit)


def _coords(H, W):
    p = np.arange(H * W, dtype=np.int32)
    return jnp.asarray(np.stack([p // W, p % W]).astype(np.int32))  # (2, H*W)


def _conv_bn_stats(x, coords, w_mat, H, W):
    N, Cin, HW = x.shape
    Cout = w_mat.shape[0]
    kern = functools.partial(conv3x3_kernel, H=H, W=W, Cin=Cin)
    return pl.pallas_call(
        kern,
        out_shape=(jax.ShapeDtypeStruct((N, Cout, HW), jnp.float32),
                   jax.ShapeDtypeStruct((N, Cout, 2), jnp.float32)),
        grid_spec=pltpu.PrefetchScalarGridSpec(
            num_scalar_prefetch=0, grid=(N,),
            in_specs=[
                pl.BlockSpec((1, Cin, HW), lambda n: (n, 0, 0)),
                pl.BlockSpec((2, HW), lambda n: (0, 0)),
                pl.BlockSpec((Cout, 9 * Cin), lambda n: (0, 0)),
            ],
            out_specs=[
                pl.BlockSpec((1, Cout, HW), lambda n: (n, 0, 0)),
                pl.BlockSpec((1, Cout, 2), lambda n: (n, 0, 0)),
            ],
            scratch_shapes=[pltpu.VMEM((Cin, 2 * HW), jnp.float32),
                            pltpu.VMEM((9 * Cin, HW), jnp.bfloat16)],
        ),
        compiler_params=_cparams(),
    )(x, coords, w_mat)


def _conv_cat_bn_stats(y1, bn1, x2, coords2, w_mat, H1, W1, H2, W2, top, left):
    N, Cin, HW1 = y1.shape
    _, _, HW2 = x2.shape
    Cout = w_mat.shape[0]
    C2 = 2 * Cin
    kern = functools.partial(conv3x3_cat_kernel, H1=H1, W1=W1, H2=H2, W2=W2,
                             Cin=Cin, top=top, left=left)
    return pl.pallas_call(
        kern,
        out_shape=(jax.ShapeDtypeStruct((N, Cout, HW2), jnp.float32),
                   jax.ShapeDtypeStruct((N, Cout, 2), jnp.float32)),
        grid_spec=pltpu.PrefetchScalarGridSpec(
            num_scalar_prefetch=0, grid=(N,),
            in_specs=[
                pl.BlockSpec((1, Cin, HW1), lambda n: (n, 0, 0)),
                pl.BlockSpec((Cin, 2), lambda n: (0, 0)),
                pl.BlockSpec((1, Cin, HW2), lambda n: (n, 0, 0)),
                pl.BlockSpec((2, HW2), lambda n: (0, 0)),
                pl.BlockSpec((Cout, 9 * C2), lambda n: (0, 0)),
            ],
            out_specs=[
                pl.BlockSpec((1, Cout, HW2), lambda n: (n, 0, 0)),
                pl.BlockSpec((1, Cout, 2), lambda n: (n, 0, 0)),
            ],
            scratch_shapes=[pltpu.VMEM((C2, 2 * HW2), jnp.float32),
                            pltpu.VMEM((9 * C2, HW2), jnp.bfloat16)],
        ),
        compiler_params=_cparams(),
    )(y1, bn1, x2, coords2, w_mat)


def _upconv(y2, bn2, wt4, b4):
    N, C, HW2 = y2.shape
    M = wt4.shape[0]   # 4 * Cup
    return pl.pallas_call(
        upconv2x2_kernel,
        out_shape=jax.ShapeDtypeStruct((N, M, HW2), jnp.float32),
        grid_spec=pltpu.PrefetchScalarGridSpec(
            num_scalar_prefetch=0, grid=(N,),
            in_specs=[
                pl.BlockSpec((1, C, HW2), lambda n: (n, 0, 0)),
                pl.BlockSpec((C, 2), lambda n: (0, 0)),
                pl.BlockSpec((M, C), lambda n: (0, 0)),
                pl.BlockSpec((M, 1), lambda n: (0, 0)),
            ],
            out_specs=pl.BlockSpec((1, M, HW2), lambda n: (n, 0, 0)),
        ),
        compiler_params=_cparams(),
    )(y2, bn2, wt4, b4)


def _bn_fold(stats, count, gamma, beta, eps):
    # Finalize training-mode BatchNorm from per-batch partial sums (tiny JAX).
    s = jnp.sum(stats[:, :, 0], axis=0)
    q = jnp.sum(stats[:, :, 1], axis=0)
    mean = s / count
    var = jnp.maximum(q / count - mean * mean, 0.0)     # clamp: avoid rsqrt(NaN)
    scale = gamma * jax.lax.rsqrt(var + eps)
    shift = beta - mean * scale
    return jnp.stack([scale, shift], axis=1).astype(jnp.float32)   # (C, 2)


def decoder_forward(x1, x2, w1, w2, wt, b_up, g1, be1, g2, be2, eps=1e-5):
    """x1,x2: NCHW (PyTorch-native).  w1:(C,C,3,3) w2:(C,2C,3,3) OIHW
    (conv2 input-channel order = cat([x2, x1])).  wt:(C, C//2, 2, 2) torch
    ConvTranspose2d layout, b_up:(C//2,).  Returns NCHW output."""
    N, C, H1, W1 = x1.shape
    _, _, H2, W2 = x2.shape
    assert H2 >= H1 and W2 >= W1, "F.pad branch assumes x2 spatial >= conv1 spatial"
    Cup = wt.shape[1]
    HW1, HW2 = H1 * W1, H2 * W2

    # Free reshapes to channel-major flattened layout (no activation permutes).
    x1f = x1.reshape(N, C, HW1)
    x2f = x2.reshape(N, C, HW2)

    # One-time parameter packing: (Cout, 9*Cin) im2col weights, bf16 MXU operands.
    w1p = jnp.transpose(w1, (0, 2, 3, 1)).reshape(C, 9 * C).astype(jnp.bfloat16)
    w2p = jnp.transpose(w2, (0, 2, 3, 1)).reshape(C, 9 * 2 * C).astype(jnp.bfloat16)
    wt4 = jnp.transpose(wt, (2, 3, 1, 0)).reshape(4 * Cup, C).astype(jnp.bfloat16)
    b4 = jnp.tile(b_up, 4).reshape(4 * Cup, 1).astype(jnp.float32)

    coords1 = _coords(H1, W1)
    coords2 = _coords(H2, W2)
    top, left = (H2 - H1) // 2, (W2 - W1) // 2

    y1, st1 = _conv_bn_stats(x1f, coords1, w1p, H1, W1)
    bn1 = _bn_fold(st1, N * HW1, g1, be1, eps)

    y2, st2 = _conv_cat_bn_stats(y1, bn1, x2f, coords2, w2p,
                                 H1, W1, H2, W2, top, left)
    bn2 = _bn_fold(st2, N * HW2, g2, be2, eps)

    z = _upconv(y2, bn2, wt4, b4)                        # (N, 4*Cup, H2*W2)

    # ConvTranspose2d(k=2,s=2,p=2): interior crop + stride-2 pixel interleave.
    # The interleave is an inherent relayout of stride-2 transposed conv; done
    # once in XLA on the (small) final output instead of strided in-kernel stores.
    Hc, Wc = H2 - 2, W2 - 2
    z = z.reshape(N, 2, 2, Cup, H2, W2)[:, :, :, :, 1:H2 - 1, 1:W2 - 1]
    out = jnp.transpose(z, (0, 3, 4, 1, 5, 2)).reshape(N, Cup, 2 * Hc, 2 * Wc)
    return out


# ---------------------------------------------------------------------------
# Plain-JAX f32 reference of the same forward pass (NCHW).
# ---------------------------------------------------------------------------
def reference_decoder(x1, x2, w1, w2, wt, b_up, g1, be1, g2, be2, eps=1e-5):
    def conv_bn_relu(x, w, g, b):
        y = jax.lax.conv_general_dilated(
            x, w, window_strides=(1, 1), padding="SAME",
            dimension_numbers=("NCHW", "OIHW", "NCHW"))
        mean = jnp.mean(y, axis=(0, 2, 3), keepdims=True)
        var = jnp.mean((y - mean) ** 2, axis=(0, 2, 3), keepdims=True)
        yn = (y - mean) * jax.lax.rsqrt(var + eps)
        return jnp.maximum(yn * g.reshape(1, -1, 1, 1) + b.reshape(1, -1, 1, 1), 0.0)

    a1 = conv_bn_relu(x1, w1, g1, be1)
    dY = x2.shape[2] - a1.shape[2]
    dX = x2.shape[3] - a1.shape[3]
    a1p = jnp.pad(a1, ((0, 0), (0, 0),
                       (dY // 2, dY - dY // 2), (dX // 2, dX - dX // 2)))
    xc = jnp.concatenate([x2, a1p], axis=1)
    a2 = conv_bn_relu(xc, w2, g2, be2)

    # ConvTranspose2d(k=2, s=2, padding=2): up-sample the interior crop, add bias.
    ai = a2[:, :, 1:-1, 1:-1]
    z = jnp.einsum("ncij,coyx->noiyjx", ai, wt)
    N, Cup, Hc, _, Wc, _ = z.shape
    return z.reshape(N, Cup, 2 * Hc, 2 * Wc) + b_up.reshape(1, -1, 1, 1)


if __name__ == "__main__":
    key = jax.random.PRNGKey(0)
    ks = jax.random.split(key, 6)
    N, C, Cup = 2, 4, 2
    H1 = W1 = 14          # x1: (2, 4, 14, 14) NCHW
    H2 = W2 = 16          # x2: (2, 4, 16, 16) NCHW; diff=2 -> F.pad 1 per side

    x1 = jax.random.normal(ks[0], (N, C, H1, W1), jnp.float32)
    x2 = jax.random.normal(ks[1], (N, C, H2, W2), jnp.float32)

    # conv1: Conv2d(C, C, 3, padding=1, bias=False), OIHW.
    w1 = jax.random.normal(ks[2], (C, C, 3, 3), jnp.float32) * (2.0 / (9 * C)) ** 0.5
    # conv2: Conv2d(2C, C, 3, padding=1, bias=False); input channels = cat([x2, x1]).
    w2 = jax.random.normal(ks[3], (C, 2 * C, 3, 3), jnp.float32) * (2.0 / (18 * C)) ** 0.5
    # up: ConvTranspose2d(C, C//2, kernel_size=2, stride=2, padding=2) weight + bias.
    wt = jax.random.normal(ks[4], (C, Cup, 2, 2), jnp.float32) * (1.0 / (4 * C)) ** 0.5
    b_up = jax.random.normal(ks[5], (Cup,), jnp.float32) * 0.1
    # BatchNorm2d default init.
    g1 = jnp.ones((C,), jnp.float32)
    be1 = jnp.zeros((C,), jnp.float32)
    g2 = jnp.ones((C,), jnp.float32)
    be2 = jnp.zeros((C,), jnp.float32)

    out = jax.block_until_ready(
        decoder_forward(x1, x2, w1, w2, wt, b_up, g1, be1, g2, be2))
    ref = jax.block_until_ready(
        reference_decoder(x1, x2, w1, w2, wt, b_up, g1, be1, g2, be2))

    assert out.shape == (N, Cup, 2 * H2 - 4, 2 * W2 - 4), out.shape
    # bf16 MXU operands (f32 accumulation) -> relaxed tolerance vs f32 reference.
    np.testing.assert_allclose(np.asarray(out), np.asarray(ref), rtol=5e-2, atol=5e-2)
    print("KERNEL_OK")
</pallas_src>

<mosaic_0001>
module attributes {stable_mosaic.version = 11 : i64} {
  func.func @conv3x3_kernel(%arg0: i32, %arg1: memref<1x4x196xf32, #tpu.memory_space<vmem>>, %arg2: memref<2x196xi32, #tpu.memory_space<vmem>>, %arg3: memref<4x36xbf16, #tpu.memory_space<vmem>>, %arg4: memref<1x4x196xf32, #tpu.memory_space<vmem>>, %arg5: memref<1x4x2xf32, #tpu.memory_space<vmem>>, %arg6: memref<4x392xf32, #tpu.memory_space<vmem>>, %arg7: memref<36x196xbf16, #tpu.memory_space<vmem>>) attributes {dimension_semantics = [#tpu.dimension_semantics<parallel>], iteration_bounds = array<i64: 2>, scalar_prefetch = 0 : i64, scratch_operands = 2 : i64, tpu.core_type = #tpu.core_type<tc>, window_params = [{transform_indices = @transform_0, window_bounds = array<i64: 1, 4, 196>}, {pipeline_mode = #tpu.pipeline_mode<synchronous>, transform_indices = @transform_1, window_bounds = array<i64: 2, 196>}, {pipeline_mode = #tpu.pipeline_mode<synchronous>, transform_indices = @transform_2, window_bounds = array<i64: 4, 36>}, {transform_indices = @transform_3, window_bounds = array<i64: 1, 4, 196>}, {transform_indices = @transform_4, window_bounds = array<i64: 1, 4, 2>}]} {
    %c0 = arith.constant 0 : index
    %c0_0 = arith.constant 0 : index
    %c0_1 = arith.constant 0 : index
    %0 = vector.load %arg1[%c0, %c0_0, %c0_1] : memref<1x4x196xf32, #tpu.memory_space<vmem>>, vector<1x4x196xf32>
    %1 = vector.shape_cast %0 : vector<1x4x196xf32> to vector<4x196xf32>
    %c0_2 = arith.constant 0 : index
    %c0_3 = arith.constant 0 : index
    %2 = vector.load %arg6[%c0_2, %c0_3] : memref<4x392xf32, #tpu.memory_space<vmem>>, vector<4x196xf32>
    tpu.vector_store %arg6[%c0_2, %c0_3], %1 {strides = array<i32>} : memref<4x392xf32, #tpu.memory_space<vmem>>, vector<4x196xf32>,
    %c0_4 = arith.constant 0 : index
    %c196 = arith.constant 196 : index
    %3 = vector.load %arg6[%c0_4, %c196] : memref<4x392xf32, #tpu.memory_space<vmem>>, vector<4x196xf32>
    tpu.vector_store %arg6[%c0_4, %c196], %1 {strides = array<i32>} : memref<4x392xf32, #tpu.memory_space<vmem>>, vector<4x196xf32>,
    %c0_5 = arith.constant 0 : index
    %c0_6 = arith.constant 0 : index
    %4 = vector.load %arg2[%c0_5, %c0_6] : memref<2x196xi32, #tpu.memory_space<vmem>>, vector<1x196xi32>
    %c1 = arith.constant 1 : index
    %c0_7 = arith.constant 0 : index
    %5 = vector.load %arg2[%c1, %c0_7] : memref<2x196xi32, #tpu.memory_space<vmem>>, vector<1x196xi32>
    %c0_8 = arith.constant 0 : index
    %c181 = arith.constant 181 : index
    %6 = vector.load %arg6[%c0_8, %c181] : memref<4x392xf32, #tpu.memory_space<vmem>>, vector<4x196xf32>
    %c-1_i32 = arith.constant -1 : i32
    %7 = vector.broadcast %c-1_i32 : i32 to vector<1x196xi32>
    %8 = arith.addi %4, %7 : vector<1x196xi32>
    %c0_i32 = arith.constant 0 : i32
    %9 = vector.broadcast %c0_i32 : i32 to vector<1x196xi32>
    %10 = arith.cmpi sge, %8, %9 : vector<1x196xi32>
    %c-1_i32_9 = arith.constant -1 : i32
    %11 = vector.broadcast %c-1_i32_9 : i32 to vector<1x196xi32>
    %12 = arith.addi %4, %11 : vector<1x196xi32>
    %c14_i32 = arith.constant 14 : i32
    %13 = vector.broadcast %c14_i32 : i32 to vector<1x196xi32>
    %14 = arith.cmpi slt, %12, %13 : vector<1x196xi32>
    %15 = arith.andi %10, %14 : vector<1x196xi1>
    %c-1_i32_10 = arith.constant -1 : i32
    %16 = vector.broadcast %c-1_i32_10 : i32 to vector<1x196xi32>
    %17 = arith.addi %5, %16 : vector<1x196xi32>
    %c0_i32_11 = arith.constant 0 : i32
    %18 = vector.broadcast %c0_i32_11 : i32 to vector<1x196xi32>
    %19 = arith.cmpi sge, %17, %18 : vector<1x196xi32>
    %20 = arith.andi %15, %19 : vector<1x196xi1>
    %c-1_i32_12 = arith.constant -1 : i32
    %21 = vector.broadcast %c-1_i32_12 : i32 to vector<1x196xi32>
    %22 = arith.addi %5, %21 : vector<1x196xi32>
    %c14_i32_13 = arith.constant 14 : i32
    %23 = vector.broadcast %c14_i32_13 : i32 to vector<1x196xi32>
    %24 = arith.cmpi slt, %22, %23 : vector<1x196xi32>
    %25 = arith.andi %20, %24 : vector<1x196xi1>
    %cst = arith.constant 0.000000e+00 : f32
    %26 = vector.shape_cast %25 : vector<1x196xi1> to vector<1x196xi1>
    %27 = vector.broadcast %26 : vector<1x196xi1> to vector<4x196xi1>
    %28 = vector.broadcast %cst : f32 to vector<4x196xf32>
    %29 = arith.select %27, %6, %28 : vector<4x196xi1>, vector<4x196xf32>
    %30 = arith.truncf %29 : vector<4x196xf32> to vector<4x196xbf16>
    %c0_14 = arith.constant 0 : index
    %c0_15 = arith.constant 0 : index
    %31 = vector.load %arg7[%c0_14, %c0_15] : memref<36x196xbf16, #tpu.memory_space<vmem>>, vector<4x196xbf16>
    tpu.vector_store %arg7[%c0_14, %c0_15], %30 {strides = array<i32>} : memref<36x196xbf16, #tpu.memory_space<vmem>>, vector<4x196xbf16>,
    %c0_16 = arith.constant 0 : index
    %c182 = arith.constant 182 : index
    %32 = vector.load %arg6[%c0_16, %c182] : memref<4x392xf32, #tpu.memory_space<vmem>>, vector<4x196xf32>
    %c-1_i32_17 = arith.constant -1 : i32
    %33 = vector.broadcast %c-1_i32_17 : i32 to vector<1x196xi32>
    %34 = arith.addi %4, %33 : vector<1x196xi32>
    %c0_i32_18 = arith.constant 0 : i32
    %35 = vector.broadcast %c0_i32_18 : i32 to vector<1x196xi32>
    %36 = arith.cmpi sge, %34, %35 : vector<1x196xi32>
    %c-1_i32_19 = arith.constant -1 : i32
    %37 = vector.broadcast %c-1_i32_19 : i32 to vector<1x196xi32>
    %38 = arith.addi %4, %37 : vector<1x196xi32>
    %c14_i32_20 = arith.constant 14 : i32
    %39 = vector.broadcast %c14_i32_20 : i32 to vector<1x196xi32>
    %40 = arith.cmpi slt, %38, %39 : vector<1x196xi32>
    %41 = arith.andi %36, %40 : vector<1x196xi1>
    %c0_i32_21 = arith.constant 0 : i32
    %42 = vector.broadcast %c0_i32_21 : i32 to vector<1x196xi32>
    %43 = arith.addi %5, %42 : vector<1x196xi32>
    %c0_i32_22 = arith.constant 0 : i32
    %44 = vector.broadcast %c0_i32_22 : i32 to vector<1x196xi32>
    %45 = arith.cmpi sge, %43, %44 : vector<1x196xi32>
    %46 = arith.andi %41, %45 : vector<1x196xi1>
    %c0_i32_23 = arith.constant 0 : i32
    %47 = vector.broadcast %c0_i32_23 : i32 to vector<1x196xi32>
    %48 = arith.addi %5, %47 : vector<1x196xi32>
    %c14_i32_24 = arith.constant 14 : i32
    %49 = vector.broadcast %c14_i32_24 : i32 to vector<1x196xi32>
    %50 = arith.cmpi slt, %48, %49 : vector<1x196xi32>
    %51 = arith.andi %46, %50 : vector<1x196xi1>
    %cst_25 = arith.constant 0.000000e+00 : f32
    %52 = vector.shape_cast %51 : vector<1x196xi1> to vector<1x196xi1>
    %53 = vector.broadcast %52 : vector<1x196xi1> to vector<4x196xi1>
    %54 = vector.broadcast %cst_25 : f32 to vector<4x196xf32>
    %55 = arith.select %53, %32, %54 : vector<4x196xi1>, vector<4x196xf32>
    %56 = arith.truncf %55 : vector<4x196xf32> to vector<4x196xbf16>
    %c4 = arith.constant 4 : index
    %c0_26 = arith.constant 0 : index
    %57 = vector.load %arg7[%c4, %c0_26] : memref<36x196xbf16, #tpu.memory_space<vmem>>, vector<4x196xbf16>
    tpu.vector_store %arg7[%c4, %c0_26], %56 {strides = array<i32>} : memref<36x196xbf16, #tpu.memory_space<vmem>>, vector<4x196xbf16>,
    %c0_27 = arith.constant 0 : index
    %c183 = arith.constant 183 : index
    %58 = vector.load %arg6[%c0_27, %c183] : memref<4x392xf32, #tpu.memory_space<vmem>>, vector<4x196xf32>
    %c-1_i32_28 = arith.constant -1 : i32
    %59 = vector.broadcast %c-1_i32_28 : i32 to vector<1x196xi32>
    %60 = arith.addi %4, %59 : vector<1x196xi32>
    %c0_i32_29 = arith.constant 0 : i32
    %61 = vector.broadcast %c0_i32_29 : i32 to vector<1x196xi32>
    %62 = arith.cmpi sge, %60, %61 : vector<1x196xi32>
    %c-1_i32_30 = arith.constant -1 : i32
    %63 = vector.broadcast %c-1_i32_30 : i32 to vector<1x196xi32>
    %64 = arith.addi %4, %63 : vector<1x196xi32>
    %c14_i32_31 = arith.constant 14 : i32
    %65 = vector.broadcast %c14_i32_31 : i32 to vector<1x196xi32>
    %66 = arith.cmpi slt, %64, %65 : vector<1x196xi32>
    %67 = arith.andi %62, %66 : vector<1x196xi1>
    %c1_i32 = arith.constant 1 : i32
    %68 = vector.broadcast %c1_i32 : i32 to vector<1x196xi32>
    %69 = arith.addi %5, %68 : vector<1x196xi32>
    %c0_i32_32 = arith.constant 0 : i32
    %70 = vector.broadcast %c0_i32_32 : i32 to vector<1x196xi32>
    %71 = arith.cmpi sge, %69, %70 : vector<1x196xi32>
    %72 = arith.andi %67, %71 : vector<1x196xi1>
    %c1_i32_33 = arith.constant 1 : i32
    %73 = vector.broadcast %c1_i32_33 : i32 to vector<1x196xi32>
    %74 = arith.addi %5, %73 : vector<1x196xi32>
    %c14_i32_34 = arith.constant 14 : i32
    %75 = vector.broadcast %c14_i32_34 : i32 to vector<1x196xi32>
    %76 = arith.cmpi slt, %74, %75 : vector<1x196xi32>
    %77 = arith.andi %72, %76 : vector<1x196xi1>
    %cst_35 = arith.constant 0.000000e+00 : f32
    %78 = vector.shape_cast %77 : vector<1x196xi1> to vector<1x196xi1>
    %79 = vector.broadcast %78 : vector<1x196xi1> to vector<4x196xi1>
    %80 = vector.broadcast %cst_35 : f32 to vector<4x196xf32>
    %81 = arith.select %79, %58, %80 : vector<4x196xi1>, vector<4x196xf32>
    %82 = arith.truncf %81 : vector<4x196xf32> to vector<4x196xbf16>
    %c8 = arith.constant 8 : index
    %c0_36 = arith.constant 0 : index
    %83 = vector.load %arg7[%c8, %c0_36] : memref<36x196xbf16, #tpu.memory_space<vmem>>, vector<4x196xbf16>
    tpu.vector_store %arg7[%c8, %c0_36], %82 {strides = array<i32>} : memref<36x196xbf16, #tpu.memory_space<vmem>>, vector<4x196xbf16>,
    %c0_37 = arith.constant 0 : index
    %c195 = arith.constant 195 : index
    %84 = vector.load %arg6[%c0_37, %c195] : memref<4x392xf32, #tpu.memory_space<vmem>>, vector<4x196xf32>
    %c0_i32_38 = arith.constant 0 : i32
    %85 = vector.broadcast %c0_i32_38 : i32 to vector<1x196xi32>
    %86 = arith.addi %4, %85 : vector<1x196xi32>
    %c0_i32_39 = arith.constant 0 : i32
    %87 = vector.broadcast %c0_i32_39 : i32 to vector<1x196xi32>
    %88 = arith.cmpi sge, %86, %87 : vector<1x196xi32>
    %c0_i32_40 = arith.constant 0 : i32
    %89 = vector.broadcast %c0_i32_40 : i32 to vector<1x196xi32>
    %90 = arith.addi %4, %89 : vector<1x196xi32>
    %c14_i32_41 = arith.constant 14 : i32
    %91 = vector.broadcast %c14_i32_41 : i32 to vector<1x196xi32>
    %92 = arith.cmpi slt, %90, %91 : vector<1x196xi32>
    %93 = arith.andi %88, %92 : vector<1x196xi1>
    %c-1_i32_42 = arith.constant -1 : i32
    %94 = vector.broadcast %c-1_i32_42 : i32 to vector<1x196xi32>
    %95 = arith.addi %5, %94 : vector<1x196xi32>
    %c0_i32_43 = arith.constant 0 : i32
    %96 = vector.broadcast %c0_i32_43 : i32 to vector<1x196xi32>
    %97 = arith.cmpi sge, %95, %96 : vector<1x196xi32>
    %98 = arith.andi %93, %97 : vector<1x196xi1>
    %c-1_i32_44 = arith.constant -1 : i32
    %99 = vector.broadcast %c-1_i32_44 : i32 to vector<1x196xi32>
    %100 = arith.addi %5, %99 : vector<1x196xi32>
    %c14_i32_45 = arith.constant 14 : i32
    %101 = vector.broadcast %c14_i32_45 : i32 to vector<1x196xi32>
    %102 = arith.cmpi slt, %100, %101 : vector<1x196xi32>
    %103 = arith.andi %98, %102 : vector<1x196xi1>
    %cst_46 = arith.constant 0.000000e+00 : f32
    %104 = vector.shape_cast %103 : vector<1x196xi1> to vector<1x196xi1>
    %105 = vector.broadcast %104 : vector<1x196xi1> to vector<4x196xi1>
    %106 = vector.broadcast %cst_46 : f32 to vector<4x196xf32>
    %107 = arith.select %105, %84, %106 : vector<4x196xi1>, vector<4x196xf32>
    %108 = arith.truncf %107 : vector<4x196xf32> to vector<4x196xbf16>
    %c12 = arith.constant 12 : index
    %c0_47 = arith.constant 0 : index
    %109 = vector.load %arg7[%c12, %c0_47] : memref<36x196xbf16, #tpu.memory_space<vmem>>, vector<4x196xbf16>
    tpu.vector_store %arg7[%c12, %c0_47], %108 {strides = array<i32>} : memref<36x196xbf16, #tpu.memory_space<vmem>>, vector<4x196xbf16>,
    %c0_48 = arith.constant 0 : index
    %c0_49 = arith.constant 0 : index
    %110 = vector.load %arg6[%c0_48, %c0_49] : memref<4x392xf32, #tpu.memory_space<vmem>>, vector<4x196xf32>
    %c0_i32_50 = arith.constant 0 : i32
    %111 = vector.broadcast %c0_i32_50 : i32 to vector<1x196xi32>
    %112 = arith.addi %4, %111 : vector<1x196xi32>
    %c0_i32_51 = arith.constant 0 : i32
    %113 = vector.broadcast %c0_i32_51 : i32 to vector<1x196xi32>
    %114 = arith.cmpi sge, %112, %113 : vector<1x196xi32>
    %c0_i32_52 = arith.constant 0 : i32
    %115 = vector.broadcast %c0_i32_52 : i32 to vector<1x196xi32>
    %116 = arith.addi %4, %115 : vector<1x196xi32>
    %c14_i32_53 = arith.constant 14 : i32
    %117 = vector.broadcast %c14_i32_53 : i32 to vector<1x196xi32>
    %118 = arith.cmpi slt, %116, %117 : vector<1x196xi32>
    %119 = arith.andi %114, %118 : vector<1x196xi1>
    %c0_i32_54 = arith.constant 0 : i32
    %120 = vector.broadcast %c0_i32_54 : i32 to vector<1x196xi32>
    %121 = arith.addi %5, %120 : vector<1x196xi32>
    %c0_i32_55 = arith.constant 0 : i32
    %122 = vector.broadcast %c0_i32_55 : i32 to vector<1x196xi32>
    %123 = arith.cmpi sge, %121, %122 : vector<1x196xi32>
    %124 = arith.andi %119, %123 : vector<1x196xi1>
    %c0_i32_56 = arith.constant 0 : i32
    %125 = vector.broadcast %c0_i32_56 : i32 to vector<1x196xi32>
    %126 = arith.addi %5, %125 : vector<1x196xi32>
    %c14_i32_57 = arith.constant 14 : i32
    %127 = vector.broadcast %c14_i32_57 : i32 to vector<1x196xi32>
    %128 = arith.cmpi slt, %126, %127 : vector<1x196xi32>
    %129 = arith.andi %124, %128 : vector<1x196xi1>
    %cst_58 = arith.constant 0.000000e+00 : f32
    %130 = vector.shape_cast %129 : vector<1x196xi1> to vector<1x196xi1>
    %131 = vector.broadcast %130 : vector<1x196xi1> to vector<4x196xi1>
    %132 = vector.broadcast %cst_58 : f32 to vector<4x196xf32>
    %133 = arith.select %131, %110, %132 : vector<4x196xi1>, vector<4x196xf32>
    %134 = arith.truncf %133 : vector<4x196xf32> to vector<4x196xbf16>
    %c16 = arith.constant 16 : index
    %c0_59 = arith.constant 0 : index
    %135 = vector.load %arg7[%c16, %c0_59] : memref<36x196xbf16, #tpu.memory_space<vmem>>, vector<4x196xbf16>
    tpu.vector_store %arg7[%c16, %c0_59], %134 {strides = array<i32>} : memref<36x196xbf16, #tpu.memory_space<vmem>>, vector<4x196xbf16>,
    %c0_60 = arith.constant 0 : index
    %c1_61 = arith.constant 1 : index
    %136 = vector.load %arg6[%c0_60, %c1_61] : memref<4x392xf32, #tpu.memory_space<vmem>>, vector<4x196xf32>
    %c0_i32_62 = arith.constant 0 : i32
    %137 = vector.broadcast %c0_i32_62 : i32 to vector<1x196xi32>
    %138 = arith.addi %4, %137 : vector<1x196xi32>
    %c0_i32_63 = arith.constant 0 : i32
    %139 = vector.broadcast %c0_i32_63 : i32 to vector<1x196xi32>
    %140 = arith.cmpi sge, %138, %139 : vector<1x196xi32>
    %c0_i32_64 = arith.constant 0 : i32
    %141 = vector.broadcast %c0_i32_64 : i32 to vector<1x196xi32>
    %142 = arith.addi %4, %141 : vector<1x196xi32>
    %c14_i32_65 = arith.constant 14 : i32
    %143 = vector.broadcast %c14_i32_65 : i32 to vector<1x196xi32>
    %144 = arith.cmpi slt, %142, %143 : vector<1x196xi32>
    %145 = arith.andi %140, %144 : vector<1x196xi1>
    %c1_i32_66 = arith.constant 1 : i32
    %146 = vector.broadcast %c1_i32_66 : i32 to vector<1x196xi32>
    %147 = arith.addi %5, %146 : vector<1x196xi32>
    %c0_i32_67 = arith.constant 0 : i32
    %148 = vector.broadcast %c0_i32_67 : i32 to vector<1x196xi32>
    %149 = arith.cmpi sge, %147, %148 : vector<1x196xi32>
    %150 = arith.andi %145, %149 : vector<1x196xi1>
    %c1_i32_68 = arith.constant 1 : i32
    %151 = vector.broadcast %c1_i32_68 : i32 to vector<1x196xi32>
    %152 = arith.addi %5, %151 : vector<1x196xi32>
    %c14_i32_69 = arith.constant 14 : i32
    %153 = vector.broadcast %c14_i32_69 : i32 to vector<1x196xi32>
    %154 = arith.cmpi slt, %152, %153 : vector<1x196xi32>
    %155 = arith.andi %150, %154 : vector<1x196xi1>
    %cst_70 = arith.constant 0.000000e+00 : f32
    %156 = vector.shape_cast %155 : vector<1x196xi1> to vector<1x196xi1>
    %157 = vector.broadcast %156 : vector<1x196xi1> to vector<4x196xi1>
    %158 = vector.broadcast %cst_70 : f32 to vector<4x196xf32>
    %159 = arith.select %157, %136, %158 : vector<4x196xi1>, vector<4x196xf32>
    %160 = arith.truncf %159 : vector<4x196xf32> to vector<4x196xbf16>
    %c20 = arith.constant 20 : index
    %c0_71 = arith.constant 0 : index
    %161 = vector.load %arg7[%c20, %c0_71] : memref<36x196xbf16, #tpu.memory_space<vmem>>, vector<4x196xbf16>
    tpu.vector_store %arg7[%c20, %c0_71], %160 {strides = array<i32>} : memref<36x196xbf16, #tpu.memory_space<vmem>>, vector<4x196xbf16>,
    %c0_72 = arith.constant 0 : index
    %c13 = arith.constant 13 : index
    %162 = vector.load %arg6[%c0_72, %c13] : memref<4x392xf32, #tpu.memory_space<vmem>>, vector<4x196xf32>
    %c1_i32_73 = arith.constant 1 : i32
    %163 = vector.broadcast %c1_i32_73 : i32 to vector<1x196xi32>
    %164 = arith.addi %4, %163 : vector<1x196xi32>
    %c0_i32_74 = arith.constant 0 : i32
    %165 = vector.broadcast %c0_i32_74 : i32 to vector<1x196xi32>
    %166 = arith.cmpi sge, %164, %165 : vector<1x196xi32>
    %c1_i32_75 = arith.constant 1 : i32
    %167 = vector.broadcast %c1_i32_75 : i32 to vector<1x196xi32>
    %168 = arith.addi %4, %167 : vector<1x196xi32>
    %c14_i32_76 = arith.constant 14 : i32
    %169 = vector.broadcast %c14_i32_76 : i32 to vector<1x196xi32>
    %170 = arith.cmpi slt, %168, %169 : vector<1x196xi32>
    %171 = arith.andi %166, %170 : vector<1x196xi1>
    %c-1_i32_77 = arith.constant -1 : i32
    %172 = vector.broadcast %c-1_i32_77 : i32 to vector<1x196xi32>
    %173 = arith.addi %5, %172 : vector<1x196xi32>
    %c0_i32_78 = arith.constant 0 : i32
    %174 = vector.broadcast %c0_i32_78 : i32 to vector<1x196xi32>
    %175 = arith.cmpi sge, %173, %174 : vector<1x196xi32>
    %176 = arith.andi %171, %175 : vector<1x196xi1>
    %c-1_i32_79 = arith.constant -1 : i32
    %177 = vector.broadcast %c-1_i32_79 : i32 to vector<1x196xi32>
    %178 = arith.addi %5, %177 : vector<1x196xi32>
    %c14_i32_80 = arith.constant 14 : i32
    %179 = vector.broadcast %c14_i32_80 : i32 to vector<1x196xi32>
    %180 = arith.cmpi slt, %178, %179 : vector<1x196xi32>
    %181 = arith.andi %176, %180 : vector<1x196xi1>
    %cst_81 = arith.constant 0.000000e+00 : f32
    %182 = vector.shape_cast %181 : vector<1x196xi1> to vector<1x196xi1>
    %183 = vector.broadcast %182 : vector<1x196xi1> to vector<4x196xi1>
    %184 = vector.broadcast %cst_81 : f32 to vector<4x196xf32>
    %185 = arith.select %183, %162, %184 : vector<4x196xi1>, vector<4x196xf32>
    %186 = arith.truncf %185 : vector<4x196xf32> to vector<4x196xbf16>
    %c24 = arith.constant 24 : index
    %c0_82 = arith.constant 0 : index
    %187 = vector.load %arg7[%c24, %c0_82] : memref<36x196xbf16, #tpu.memory_space<vmem>>, vector<4x196xbf16>
    tpu.vector_store %arg7[%c24, %c0_82], %186 {strides = array<i32>} : memref<36x196xbf16, #tpu.memory_space<vmem>>, vector<4x196xbf16>,
    %c0_83 = arith.constant 0 : index
    %c14 = arith.constant 14 : index
    %188 = vector.load %arg6[%c0_83, %c14] : memref<4x392xf32, #tpu.memory_space<vmem>>, vector<4x196xf32>
    %c1_i32_84 = arith.constant 1 : i32
    %189 = vector.broadcast %c1_i32_84 : i32 to vector<1x196xi32>
    %190 = arith.addi %4, %189 : vector<1x196xi32>
    %c0_i32_85 = arith.constant 0 : i32
    %191 = vector.broadcast %c0_i32_85 : i32 to vector<1x196xi32>
    %192 = arith.cmpi sge, %190, %191 : vector<1x196xi32>
    %c1_i32_86 = arith.constant 1 : i32
    %193 = vector.broadcast %c1_i32_86 : i32 to vector<1x196xi32>
    %194 = arith.addi %4, %193 : vector<1x196xi32>
    %c14_i32_87 = arith.constant 14 : i32
    %195 = vector.broadcast %c14_i32_87 : i32 to vector<1x196xi32>
    %196 = arith.cmpi slt, %194, %195 : vector<1x196xi32>
    %197 = arith.andi %192, %196 : vector<1x196xi1>
    %c0_i32_88 = arith.constant 0 : i32
    %198 = vector.broadcast %c0_i32_88 : i32 to vector<1x196xi32>
    %199 = arith.addi %5, %198 : vector<1x196xi32>
    %c0_i32_89 = arith.constant 0 : i32
    %200 = vector.broadcast %c0_i32_89 : i32 to vector<1x196xi32>
    %201 = arith.cmpi sge, %199, %200 : vector<1x196xi32>
    %202 = arith.andi %197, %201 : vector<1x196xi1>
    %c0_i32_90 = arith.constant 0 : i32
    %203 = vector.broadcast %c0_i32_90 : i32 to vector<1x196xi32>
    %204 = arith.addi %5, %203 : vector<1x196xi32>
    %c14_i32_91 = arith.constant 14 : i32
    %205 = vector.broadcast %c14_i32_91 : i32 to vector<1x196xi32>
    %206 = arith.cmpi slt, %204, %205 : vector<1x196xi32>
    %207 = arith.andi %202, %206 : vector<1x196xi1>
    %cst_92 = arith.constant 0.000000e+00 : f32
    %208 = vector.shape_cast %207 : vector<1x196xi1> to vector<1x196xi1>
    %209 = vector.broadcast %208 : vector<1x196xi1> to vector<4x196xi1>
    %210 = vector.broadcast %cst_92 : f32 to vector<4x196xf32>
    %211 = arith.select %209, %188, %210 : vector<4x196xi1>, vector<4x196xf32>
    %212 = arith.truncf %211 : vector<4x196xf32> to vector<4x196xbf16>
    %c28 = arith.constant 28 : index
    %c0_93 = arith.constant 0 : index
    %213 = vector.load %arg7[%c28, %c0_93] : memref<36x196xbf16, #tpu.memory_space<vmem>>, vector<4x196xbf16>
    tpu.vector_store %arg7[%c28, %c0_93], %212 {strides = array<i32>} : memref<36x196xbf16, #tpu.memory_space<vmem>>, vector<4x196xbf16>,
    %c0_94 = arith.constant 0 : index
    %c15 = arith.constant 15 : index
    %214 = vector.load %arg6[%c0_94, %c15] : memref<4x392xf32, #tpu.memory_space<vmem>>, vector<4x196xf32>
    %c1_i32_95 = arith.constant 1 : i32
    %215 = vector.broadcast %c1_i32_95 : i32 to vector<1x196xi32>
    %216 = arith.addi %4, %215 : vector<1x196xi32>
    %c0_i32_96 = arith.constant 0 : i32
    %217 = vector.broadcast %c0_i32_96 : i32 to vector<1x196xi32>
    %218 = arith.cmpi sge, %216, %217 : vector<1x196xi32>
    %c1_i32_97 = arith.constant 1 : i32
    %219 = vector.broadcast %c1_i32_97 : i32 to vector<1x196xi32>
    %220 = arith.addi %4, %219 : vector<1x196xi32>
    %c14_i32_98 = arith.constant 14 : i32
    %221 = vector.broadcast %c14_i32_98 : i32 to vector<1x196xi32>
    %222 = arith.cmpi slt, %220, %221 : vector<1x196xi32>
    %223 = arith.andi %218, %222 : vector<1x196xi1>
    %c1_i32_99 = arith.constant 1 : i32
    %224 = vector.broadcast %c1_i32_99 : i32 to vector<1x196xi32>
    %225 = arith.addi %5, %224 : vector<1x196xi32>
    %c0_i32_100 = arith.constant 0 : i32
    %226 = vector.broadcast %c0_i32_100 : i32 to vector<1x196xi32>
    %227 = arith.cmpi sge, %225, %226 : vector<1x196xi32>
    %228 = arith.andi %223, %227 : vector<1x196xi1>
    %c1_i32_101 = arith.constant 1 : i32
    %229 = vector.broadcast %c1_i32_101 : i32 to vector<1x196xi32>
    %230 = arith.addi %5, %229 : vector<1x196xi32>
    %c14_i32_102 = arith.constant 14 : i32
    %231 = vector.broadcast %c14_i32_102 : i32 to vector<1x196xi32>
    %232 = arith.cmpi slt, %230, %231 : vector<1x196xi32>
    %233 = arith.andi %228, %232 : vector<1x196xi1>
    %cst_103 = arith.constant 0.000000e+00 : f32
    %234 = vector.shape_cast %233 : vector<1x196xi1> to vector<1x196xi1>
    %235 = vector.broadcast %234 : vector<1x196xi1> to vector<4x196xi1>
    %236 = vector.broadcast %cst_103 : f32 to vector<4x196xf32>
    %237 = arith.select %235, %214, %236 : vector<4x196xi1>, vector<4x196xf32>
    %238 = arith.truncf %237 : vector<4x196xf32> to vector<4x196xbf16>
    %c32 = arith.constant 32 : index
    %c0_104 = arith.constant 0 : index
    %239 = vector.load %arg7[%c32, %c0_104] : memref<36x196xbf16, #tpu.memory_space<vmem>>, vector<4x196xbf16>
    tpu.vector_store %arg7[%c32, %c0_104], %238 {strides = array<i32>} : memref<36x196xbf16, #tpu.memory_space<vmem>>, vector<4x196xbf16>,
    %c0_105 = arith.constant 0 : index
    %c0_106 = arith.constant 0 : index
    %240 = vector.load %arg3[%c0_105, %c0_106] : memref<4x36xbf16, #tpu.memory_space<vmem>>, vector<4x36xbf16>
    %c0_107 = arith.constant 0 : index
    %c0_108 = arith.constant 0 : index
    %241 = vector.load %arg7[%c0_107, %c0_108] : memref<36x196xbf16, #tpu.memory_space<vmem>>, vector<36x196xbf16>
    %cst_109 = arith.constant dense<0.000000e+00> : vector<4x196xf32>
    %242 = tpu.matmul %240, %241, %cst_109 {dimension_numbers = #tpu.dot_dimension_numbers<[1], [0], [0], [1], [0, 0, 1, 1], [], []>} : vector<4x36xbf16>, vector<36x196xbf16>, vector<4x196xf32> -> vector<4x196xf32>
    %c0_110 = arith.constant 0 : index
    %c0_111 = arith.constant 0 : index
    %c0_112 = arith.constant 0 : index
    %243 = vector.load %arg4[%c0_110, %c0_111, %c0_112] : memref<1x4x196xf32, #tpu.memory_space<vmem>>, vector<1x4x196xf32>
    %244 = vector.shape_cast %243 : vector<1x4x196xf32> to vector<4x196xf32>
    %245 = vector.shape_cast %242 : vector<4x196xf32> to vector<1x4x196xf32>
    tpu.vector_store %arg4[%c0_110, %c0_111, %c0_112], %245 {strides = array<i32>} : memref<1x4x196xf32, #tpu.memory_space<vmem>>, vector<1x4x196xf32>,
    %cst_113 = arith.constant dense<0.000000e+00> : vector<4xf32>
    %246 = vector.multi_reduction <add>, %242, %cst_113 [1] : vector<4x196xf32> to vector<4xf32>
    %247 = vector.shape_cast %246 : vector<4xf32> to vector<4x1xf32>
    %c0_114 = arith.constant 0 : index
    %c0_115 = arith.constant 0 : index
    %c0_116 = arith.constant 0 : index
    %248 = vector.load %arg5[%c0_114, %c0_115, %c0_116] : memref<1x4x2xf32, #tpu.memory_space<vmem>>, vector<1x4x1xf32>
    %249 = vector.shape_cast %248 : vector<1x4x1xf32> to vector<4x1xf32>
    %250 = vector.shape_cast %247 : vector<4x1xf32> to vector<1x4x1xf32>
    tpu.vector_store %arg5[%c0_114, %c0_115, %c0_116], %250 {strides = array<i32>} : memref<1x4x2xf32, #tpu.memory_space<vmem>>, vector<1x4x1xf32>,
    %251 = arith.mulf %242, %242 : vector<4x196xf32>
    %cst_117 = arith.constant dense<0.000000e+00> : vector<4xf32>
    %252 = vector.multi_reduction <add>, %251, %cst_117 [1] : vector<4x196xf32> to vector<4xf32>
    %253 = vector.shape_cast %252 : vector<4xf32> to vector<4x1xf32>
    %c0_118 = arith.constant 0 : index
    %c0_119 = arith.constant 0 : index
    %c1_120 = arith.constant 1 : index
    %254 = vector.load %arg5[%c0_118, %c0_119, %c1_120] : memref<1x4x2xf32, #tpu.memory_space<vmem>>, vector<1x4x1xf32>
    %255 = vector.shape_cast %254 : vector<1x4x1xf32> to vector<4x1xf32>
    %256 = vector.shape_cast %253 : vector<4x1xf32> to vector<1x4x1xf32>
    tpu.vector_store %arg5[%c0_118, %c0_119, %c1_120], %256 {strides = array<i32>} : memref<1x4x2xf32, #tpu.memory_space<vmem>>, vector<1x4x1xf32>,
    return
  }
  func.func @transform_0(%arg0: i32) -> (i32, i32, i32) {
    %c0_i32 = arith.constant 0 : i32
    %c0_i32_0 = arith.constant 0 : i32
    %c0_i32_1 = arith.constant 0 : i32
    return %arg0, %c0_i32, %c0_i32_0 : i32, i32, i32
  }
  func.func @transform_1(%arg0: i32) -> (i32, i32) {
    %c0_i32 = arith.constant 0 : i32
    %c0_i32_0 = arith.constant 0 : i32
    %c0_i32_1 = arith.constant 0 : i32
    return %c0_i32, %c0_i32_0 : i32, i32
  }
  func.func @transform_2(%arg0: i32) -> (i32, i32) {
    %c0_i32 = arith.constant 0 : i32
    %c0_i32_0 = arith.constant 0 : i32
    %c0_i32_1 = arith.constant 0 : i32
    return %c0_i32, %c0_i32_0 : i32, i32
  }
  func.func @transform_3(%arg0: i32) -> (i32, i32, i32) {
    %c0_i32 = arith.constant 0 : i32
    %c0_i32_0 = arith.constant 0 : i32
    %c0_i32_1 = arith.constant 0 : i32
    return %arg0, %c0_i32, %c0_i32_0 : i32, i32, i32
  }
  func.func @transform_4(%arg0: i32) -> (i32, i32, i32) {
    %c0_i32 = arith.constant 0 : i32
    %c0_i32_0 = arith.constant 0 : i32
    %c0_i32_1 = arith.constant 0 : i32
    return %arg0, %c0_i32, %c0_i32_0 : i32, i32, i32
  }
}

</mosaic_0001>

<bundles_post_ra>
// kernel: tpu_custom_call.1
= control target key start
LH: loop header
LB: loop body
LE: loop exit
PB: predicated region body
PF: predicated region fallthrough
CT: control target
= control target key end

     0   :  { %10 = vsyncpa [#allocation5], 0  ;;  %s1609_s0 = inlined_call_operand.hbm [shape: f32[2,4,196], index: 0, kind: input, shape index: {}]   ;;  %s1610_s1 = inlined_call_operand.hbm [shape: s32[2,196], index: 1, kind: input, shape index: {}]   ;;  %s1611_s2 = inlined_call_operand.vmem [shape: bf16[4,36], index: 2, kind: input, shape index: {}]   ;;  %s1612_s3 = inlined_call_operand.hbm [shape: f32[2,4,196], index: 3, kind: output, shape index: {0}]   ;;  %s1613_s4 = inlined_call_operand.vmem [shape: f32[2,4,2], index: 4, kind: output, shape index: {1}]  }
   0x1   :  { %12 = vsyncpa [#allocation5 + $0x1], 0 }
   0x2   :  { %13 = vsyncpa [#allocation8], 0 }
   0x3   :  { %14 = vsyncpa [#allocation6], 0 }
   0x4   :  { %16 = vsyncpa [#allocation6 + $0x1], 0  ;;  %s1163_s15 = smov 0   ;;  %s1165_s16 = smov 0  }
   0x5   :  { %s1167_s17 = smov 0   ;;  %s1169_s18 = smov 0  }
   0x6 LB: > { %s1184_s19 = sadd.s32 4294967295, %s1123_s18   ;;  %s833_s20 = sadd.s32 4294967294, %s1123_s18   ;;  %s1123_s18 = sphi %s1169_s18, %s1708_s18   ;;  %s1119_s17 = sphi %s1167_s17, %s1707_s17   ;;  %s1115_s16 = sphi %s1165_s16, %s1706_s16   ;;  %s1111_s15 = sphi %s1163_s15, %s1705_s15  }
   0x7   : > { %p42_p0 = scmp.ne.s32.totalorder %s1115_s16, %s1111_s15  ;;  %p1614_p1 = scmp.eq.s32.totalorder %s1184_s19, 0 }
   0x8   : > { %p114_p3 = scmp.eq.s32.totalorder %s833_s20, 1  ;;  %p834_p5 = scmp.ge.s32.totalorder %s1123_s18, 1 }
   0x9   : > { %p1193_p4 = por %p1614_p1, %p42_p0  ;;  %p147_p7 = scmp.lt.s32.totalorder %s1123_s18, 3 }
   0xa   : > { %p1198_p6 = por %p114_p3, %p42_p0  ;;  %s1125_s24 = smov [#allocation7]  }
   0xb   : > { %s1627_s21 = scalar_select %p1193_p4, 1, 0 }
   0xc   : > { %s1628_s22 = scalar_select %p1198_p6, 1, 0 }
   0xd   : > { %p1203_p8 = pnand %p834_p5, %p147_p7  ;;  %s160_s25 = sshll.u32 %s1125_s24, 4  ;;  %s161_s25 = int_to_ptr.vmem [resolvable:$true] %s160_s25 }
   0xe   : > { %s1211_s26 = sadd.s32 1, %s1123_s18   ;;  %s29_s30 = sadd.s32 1, %s1119_s17 }
   0xf   : > { %s1629_s23 = scalar_select %p1203_p8, 1, 0 }
  0x10   : > { %p886_p10 = pneg %p1203_p8  ;;  %s26_s28 = ssub.s32 %s1123_s18, %s1211_s26 }
  0x11   : > { %p1221_p12 = scmp.eq.s32.totalorder %s26_s28, 0  ;;  %s995_s7 = scalar_lea.hbm %s1610_s1, 64 }
  0x12   : > { %p1215_p11 = pnand %p886_p10, %p1614_p1  ;;  %p996_p0 = scmp.ne.s32.totalorder %s1610_s1, %s995_s7 }
  0x13   : > { %s1631_s29 = scalar_select %p1221_p12, 1, 0 }
  0x14   : > { %p997_p3 = pneg %p1215_p11  ;;  %p1002_p10 = scmp.lt.u32.totalorder %s995_s7, %s1610_s1 }
  0x16   : > { %p998_p5 = pnand %p997_p3, %p996_p0 }
  0x18   : > { %p999_p7 = pneg %p998_p5 }
  0x1a   : > { %p1004_p9 = pnand %p1002_p10, %p999_p7 }
  0x1c   : > { %1007 = shalt.err (!%p1004_p9)
}
  0x1d   : > { %s1008_s12 = scalar_lea.vmem %s161_s25, 64  ;;  %p1016_p6 = scmp.lt.s32.totalorder %s161_s25, %s161_s25 }
  0x1e   : > { %p1009_p1 = scmp.ne.s32.totalorder %s161_s25, %s1008_s12  ;;  %p1017_p4 = scmp.lt.s32.totalorder %s1008_s12, %s1008_s12 }
  0x20   : > { %p1011_p2 = pnand %p1009_p1, %p997_p3  ;;  %p1018_p8 = por %p1017_p4, %p1016_p6 }
  0x22   : > { %p1012_p13 = pneg %p1011_p2 }
  0x24   : > { %p1019_p12 = pnand %p1018_p8, %p1012_p13 }
  0x26   : > { %1022 = shalt.err (!%p1019_p12)
}
  0x27   : > { %889 = dma.hbm_to_vmem [thread:$0]  (!%p1215_p11), %s1610_s1, 64, %s161_s25, [#allocation8]  }
  0x28   : > { %p1632_p1 = scmp.ne.s32.totalorder %s1631_s29, 0  ;;  %p37_p2 = scmp.eq.s32.totalorder %s1123_s18, 0 }
  0x29   : > { %p1633_p4 = scmp.ne.s32.totalorder %s1119_s17, %s1115_s16  ;;  %p1634_p6 = scmp.eq.s32.totalorder %s1184_s19, 1 }
  0x2a   : > { %s1247_s20 = scalar_select %p1632_p1, %s1119_s17, %s29_s30  }
  0x2b   : > { %p1255_p8 = por %p1634_p6, %p1633_p4  ;;  %p899_p9 = scmp.lt.s32.totalorder %s1123_s18, 2 }
  0x2c   : > { %s174_s27 = sand.u32 1, %s1119_s17   ;;  %p1636_p12 = pmov %p1633_p4 }
  0x2d   : > { %s837_s28 = sshll.u32 %s174_s27, 3  ;;  %s867_s5 = sshll.u32 %s1123_s18, 7 }
  0x2e   : > { %p38_p13 = por %p37_p2, %p1636_p12  ;;  %s1268_s25 = scalar_lea.hbm %s1609_s0, %s867_s5 }
  0x2f   : > { %s178_s29 = scalar_lea.vmem [#allocation4], %s837_s28  ;;  %s175_s9 = scalar_lea.sflag [#allocation5], %s174_s27 }
  0x30   : > { %s186_s30 = sshll.u32 %s178_s29, 4  ;;  %p1270_p11 = pnand %p899_p9, %p38_p13  ;;  %s1274_s30 = int_to_ptr.vmem [resolvable:$true] %s186_s30 }
  0x31   : > { %s1023_s10 = scalar_lea.hbm %s1268_s25, 128  ;;  %s1028_s13 = scalar_lea.hbm %s1609_s0, 256 }
  0x32   : > { %p1024_p0 = scmp.ne.s32.totalorder %s1268_s25, %s1023_s10  ;;  %p1025_p3 = pneg %p1270_p11 }
  0x33   : > { %p1029_p10 = scmp.lt.u32.totalorder %s1268_s25, %s1609_s0  ;;  %p1030_p1 = scmp.lt.u32.totalorder %s1028_s13, %s1023_s10 }
  0x34   : > { %p1026_p5 = pnand %p1025_p3, %p1024_p0  ;;  %p1032_p4 = scmp.lt.u32.totalorder %s1023_s10, %s1268_s25 }
  0x35   : > { %p1031_p2 = por %p1030_p1, %p1029_p10 }
  0x36   : > { %p1027_p7 = pneg %p1026_p5 }
  0x37   : > { %p1033_p6 = por %p1032_p4, %p1031_p2 }
  0x39   : > { %p1034_p9 = pnand %p1033_p6, %p1027_p7 }
  0x3b   : > { %1037 = shalt.err (!%p1034_p9)
}
  0x3c   : > { %s1038_s27 = scalar_lea.vmem %s1274_s30, 128  ;;  %s1126_s5 = smov [#allocation4]  }
  0x3d   : > { %p1039_p12 = scmp.ne.s32.totalorder %s1274_s30, %s1038_s27  ;;  %s1043_s6 = sshll.u32 %s1126_s5, 4  ;;  %s1044_s6 = int_to_ptr.vmem [resolvable:$false] %s1043_s6 }
  0x3e   : > { %s1045_s7 = scalar_lea.vmem %s1044_s6, 256  ;;  %p1046_p5 = scmp.lt.s32.totalorder %s1274_s30, %s1044_s6 }
  0x3f   : > { %p1041_p13 = pnand %p1039_p12, %p1025_p3  ;;  %p1047_p10 = scmp.lt.s32.totalorder %s1045_s7, %s1038_s27 }
  0x41   : > { %p1042_p0 = pneg %p1041_p13  ;;  %p1048_p1 = por %p1047_p10, %p1046_p5 }
  0x43   : > { %p1049_p2 = pnand %p1048_p1, %p1042_p0 }
  0x45   : > { %1052 = shalt.err (!%p1049_p2)
}
  0x46   : > { %893 = dma.hbm_to_vmem [thread:$0]  (!%p1270_p11), %s1268_s25, 128, %s1274_s30, %s175_s9  }
  0x47   : > { %p1638_p7 = scmp.ne.s32.totalorder %s1629_s23, 0 }
  0x48   : > { %s1304_s29 = sand.u32 (!%p1638_p7), 1, %s1115_s16   ;;  %p1639_p3 = scmp.ne.s32.totalorder (!%p1638_p7), %s1627_s21, 0 }
  0x49   : > { %195 = sbr.rel (%p1638_p7) target bundleno = 727 (0x2d7), region = 32  ;;  %s841_s10 = sshll.u32 (!%p1638_p7), %s1304_s29, 3 }
  0x4a   : > { %s198_s11 = scalar_lea.sflag (!%p1638_p7), [#allocation5], %s1304_s29  ;;  %s201_s12 = scalar_lea.vmem (!%p1638_p7), [#allocation4], %s841_s10 }
  0x50   : > { %1098 = dma.done.wait (%p1639_p3), %s198_s11, 128  }
  0x51   : > { %1100 = vsyncadd (%p1639_p3), %s198_s11, 4294967168  ;;  %p1640_p11 = scmp.eq.s32.totalorder %s1184_s19, 0 }
  0x53   : > { %1102 = dma.done.wait (%p1640_p11), [#allocation8], 64   ;;  %p1641_p4 = pmov %p1640_p11 }
  0x54   : > { %vm1617_vm0 = vcmask 1043456   ;;  %vm241_vm1 = vcmask 556036   ;;  %v1127_v0 = vmov 0   ;;  %v1642_v1 = vmov 0  ;;  %v239_v2 = vld [vmem:[%s201_s12] sm:$0xff]  ;;  %s1128_s23 = smov 68  }
  0x55   : > { %1104 = vsyncadd (%p1641_p4), [#allocation8], 4294967232  ;;  %676 = vmatprep.mubr.bf16.mxu0 %v1127_v0  ;;  %245 = vrot.lane.b32.xlu0 %v239_v2, %s1128_s23  ;;  %v1326_v3 = vld [vmem:[#allocation7] ss:$2 sm:$0x3]  ;;  %v272_v5 = vlaneseq  ;;  %v1644_v6 = vmov 0 }
  0x56   : > { %vm1320_vm2 = vmor %vm241_vm1, %vm1617_vm0  ;;  %v1328_v4 = vld [vmem:[#allocation7 + $0x1] ss:$2 sm:$0x3]  ;;  %vm387_vm3 = vcmp.ge.s32.totalorder %v1326_v3, 0  ;;  %vm388_vm4 = vcmp.lt.s32.totalorder %v1326_v3, 14  ;;  %vm252_vm7 = vcmask 1044000  }
  0x57   : > { %v1643_v1 = vsel %vm1320_vm2, 4294967295, %v1642_v1  ;;  %243 = vst.msk [vmem:[#allocation2] sm:$0xff] %vm1320_vm2, %v239_v2  ;;  %vm1332_vm5 = vmand %vm387_vm3, %vm388_vm4  ;;  %vm1623_vm6 = vcmp.ge.s32.totalorder %v1328_v4, 0  ;;  %vm253_vm8 = vcmask 1047556   ;;  %vm1625_vm9 = vcmp.lt.s32.totalorder %v1328_v4, 14  ;;  %s1129_s21 = smov 61  }
  0x58   : > { %v1645_v6 = vsel %vm1332_vm5, 4294967295, %v1644_v6  ;;  %vm430_vm10 = vmand %vm1332_vm5, %vm1623_vm6  ;;  %v273_v7 = vshrl.u32 %v272_v5, 7  ;;  %vm248_vm11 = vcmask 556032   ;;  %vm256_vm13 = vcmask 60416   ;;  %s1130_s25 = smov 74   ;;  %s1131_s30 = smov 73  }
  0x59   : > { %vm254_vm12 = vmor %vm253_vm8, %vm252_vm7  ;;  %vm1618_vm3 = vcmask 1041408   ;;  %vm303_vm4 = vcmask 553988   ;;  %v1646_v24 = vmov 0  ;;  %s1132_s8 = smov 75   ;;  %s1133_s9 = smov 114   ;;  %v262_v27 = vadd.s32 4294967295, %v1326_v3 }
  0x5a   : > { %vm431_vm14 = vmand %vm430_vm10, %vm1625_vm9  ;;  %v1344_v11 = vsub.s32 0, %v273_v7  ;;  %v1346_v12 = vsub.s32 1, %v273_v7  ;;  %s1134_s13 = smov 127   ;;  %s1135_s14 = smov 113   ;;  %v1360_v28 = vadd.s32 4294967295, %v1328_v4  ;;  %v348_v29 = vadd.s32 1, %v1328_v4 }
  0x5b   : > { %v432_v13 = vsel %vm431_vm14, 1, %v1127_v0  ;;  %vm1352_vm7 = vmor %vm303_vm4, %vm1618_vm3  ;;  %s1136_s28 = smov 115   ;;  %vm263_vm8 = vcmp.ge.s32.totalorder %v262_v27, 0  ;;  %vm264_vm10 = vcmp.lt.s32.totalorder %v262_v27, 14  ;;  %v494_v30 = vadd.s32 1, %v1326_v3  ;;  %s227_s6 = scalar_lea.vmem [#allocation9], %s841_s10 }
  0x5c   : > { %v436_v14 = vrot.slane %v432_v13, %v1344_v11  ;;  %v440_v15 = vrot.slane %v432_v13, %v1346_v12  ;;  %v1647_v24 = vsel %vm1352_vm7, 4294967295, %v1646_v24  ;;  %vm351_vm2 = vcmp.lt.s32.totalorder %v348_v29, 14  ;;  %s877_s7 = sshll.u32 %s1184_s19, 7  ;;  %s726_s11 = sshll.u32 %s227_s6, 4  ;;  %s727_s11 = int_to_ptr.vmem [resolvable:$true] %s726_s11 }
  0x5d   : > { %vm495_vm0 = vcmp.ge.s32.totalorder %v494_v30, 0  ;;  %v1673_v63 = vmov 0  ;;  %s1137_s10 = smov [#allocation9]  }
  0x5e   : > { %vm441_vm15 = vcmp.eq.s32.totalorder %v436_v14, 1  ;;  %vm442_vm1 = vcmp.eq.s32.totalorder %v440_v15, 1 }
  0xc7   : > { %v246_v8 = vpop.permute.xlu0 %245 }
  0xc8   : > { %v247_v9 = vrot.slane %v246_v8, 4 }
  0xca   : > { %v249_v10 = vsel %vm248_vm11, %v247_v9, %v246_v8  ;;  %257 = vst.msk [vmem:[#allocation2 + $0xc] sm:$0xf] %vm256_vm13, %v247_v9  ;;  %vm1626_vm11 = vcmp.ge.s32.totalorder %v1360_v28, 0  ;;  %vm1624_vm13 = vcmp.lt.s32.totalorder %v1360_v28, 14 }
  0xcb   : > { %255 = vst.msk [vmem:[#allocation2 + $0x4] sm:$0xff] %vm254_vm12, %v249_v10  ;;  %vm265_vm12 = vmand %vm263_vm8, %vm264_vm10  ;;  %vm496_vm8 = vcmp.lt.s32.totalorder %v494_v30, 14 }
  0xcc   : > { %vm390_vm14 = vmand %vm1332_vm5, %vm1626_vm11 }
  0xcd   : > { %vm391_vm4 = vmand %vm390_vm14, %vm1624_vm13  ;;  %vm1650_vm13 = vcmp.ge.s32.totalorder %v1328_v4, 0 }
  0xce   : > { %vm268_vm5 = vmand %vm265_vm12, %vm1626_vm11  ;;  %v392_v32 = vsel %vm391_vm4, 1, %v1127_v0 }
  0xcf   : > { %v396_v34 = vrot.slane %v392_v32, %v1344_v11  ;;  %v400_v36 = vrot.slane %v392_v32, %v1346_v12 }
  0xd1   : > { %v386_v16 = vld [vmem:[#allocation2 + $0xc] sm:$0xf] }
  0xd2   : > { %410 = vrot.lane.b32.xlu1 %v386_v16, %s1129_s21  ;;  %v385_v17 = vld [vmem:[#allocation2 + $0x4] sm:$0xff] }
  0xd3   : > { %v532_v18 = vld [vmem:[#allocation2] sm:$0xff]  ;;  %v405_v19 = vcombine.high %v385_v17, %v385_v17 }
  0xd4   : > { %v547_v20 = vcombine.high %v532_v18, %v532_v18  ;;  %v446_v22 = vsel %vm441_vm15, %v532_v18, 0.0  ;;  %vm308_vm15 = vmand %vm265_vm12, %vm1623_vm6 }
  0xd5   : > { %v950_v21 = vpack.i.bf16 %v405_v19, %v385_v17  ;;  %vm310_vm10 = vmand %vm308_vm15, %vm1625_vm9  ;;  %vm1651_vm9 = vcmp.lt.s32.totalorder %v1360_v28, 14 }
  0xd6   : > { %v447_v23 = vsel %vm442_vm1, %v547_v20, 0.0  ;;  %v970_v26 = vpack.i.bf16 %v547_v20, %v532_v18  ;;  %vm349_vm1 = vcmp.ge.s32.totalorder %v348_v29, 0  ;;  %vm270_vm15 = vmand %vm268_vm5, %vm1651_vm9  ;;  %v311_v33 = vsel %vm310_vm10, 1, %v1127_v0 }
  0xd7   : > { %v872_v25 = vpack.c.bf16 %v447_v23, %v446_v22  ;;  %951 = vrot.lane.b32.xlu1 %v950_v21, %s1129_s21  ;;  %946 = vrot.lane.b32.xlu0 %v950_v21, %s1130_s25  ;;  %vm350_vm3 = vmand %vm265_vm12, %vm349_vm1  ;;  %vm1653_vm12 = vcmp.lt.s32.totalorder %v1328_v4, 14  ;;  %v315_v37 = vrot.slane %v311_v33, %v1344_v11  ;;  %v271_v38 = vsel %vm270_vm15, 1, %v1127_v0  ;;  %s1566_s21 = scalar_lea.hbm %s1612_s3, %s877_s7  ;;  %s708_s25 = scalar_lea.sflag [#allocation6], %s1304_s29 }
  0xd8   : > { %vm352_vm6 = vmand %vm350_vm3, %vm351_vm2  ;;  %v319_v40 = vrot.slane %v311_v33, %v1346_v12  ;;  %v275_v45 = vrot.slane %v271_v38, %v1344_v11  ;;  %v279_v46 = vrot.slane %v271_v38, %v1346_v12  ;;  %vm1419_vm10 = vcmp.eq.s32.totalorder %v400_v36, 1 }
  0xd9   : > { %456 = vst.msk [vmem:[#allocation3 + $0x10] sm:$0x33] %vm1352_vm7, %v872_v25  ;;  %vm1377_vm7 = vmand %vm495_vm0, %vm496_vm8  ;;  %vm1652_vm0 = vnez %v1645_v6  ;;  %v353_v35 = vsel %vm352_vm6, 1, %v1127_v0 }
  0xda   : > { %vm533_vm14 = vmand %vm1377_vm7, %vm1650_vm13  ;;  %v357_v42 = vrot.slane %v353_v35, %v1344_v11  ;;  %v361_v43 = vrot.slane %v353_v35, %v1346_v12  ;;  %vm1428_vm15 = vcmp.eq.s32.totalorder %v319_v40, 1  ;;  %vm1681_vm13 = vcmask 498688  }
  0xdb   : > { %961 = vrot.lane.b32.xlu1 %v950_v21, %s1131_s30  ;;  %956 = vrot.lane.b32.xlu0 %v950_v21, %s1132_s8  ;;  %vm458_vm8 = vmand %vm1652_vm0, %vm349_vm1  ;;  %vm1451_vm0 = vcmp.eq.s32.totalorder %v275_v45, 1  ;;  %s1053_s30 = scalar_lea.vmem %s727_s11, 128  ;;  %s1057_s8 = sshll.u32 %s1137_s10, 4  ;;  %s1058_s8 = int_to_ptr.vmem [resolvable:$false] %s1057_s8 }
  0xdc   : > { %vm534_vm11 = vmand %vm533_vm14, %vm1653_vm12  ;;  %vm1423_vm14 = vcmp.eq.s32.totalorder %v315_v37, 1  ;;  %vm1442_vm12 = vcmp.eq.s32.totalorder %v357_v42, 1  ;;  %p1054_p6 = scmp.ne.s32.totalorder %s727_s11, %s1053_s30  ;;  %p1060_p13 = scmp.lt.s32.totalorder %s727_s11, %s1058_s8 }
  0xdd   : > { %vm459_vm3 = vmand %vm458_vm8, %vm351_vm2  ;;  %v535_v39 = vsel %vm534_vm11, 1, %v1127_v0 }
  0xde   : > { %vm569_vm5 = vmand %vm1377_vm7, %vm349_vm1  ;;  %v460_v44 = vsel %vm459_vm3, 1, %v1127_v0  ;;  %v543_v47 = vrot.slane %v535_v39, %v1346_v12  ;;  %vm1415_vm1 = vcmp.eq.s32.totalorder %v396_v34, 1  ;;  %v539_v51 = vrot.slane %v535_v39, %v1344_v11  ;;  %p1055_p9 = pnand %p1054_p6, %p1255_p8 }
  0xdf   : > { %971 = vrot.lane.b32.xlu1 %v970_v26, %s1133_s9  ;;  %966 = vrot.lane.b32.xlu0 %v970_v26, %s1134_s13  ;;  %vm570_vm11 = vmand %vm569_vm5, %vm351_vm2  ;;  %v464_v53 = vrot.slane %v460_v44, %v1344_v11  ;;  %v468_v54 = vrot.slane %v460_v44, %v1346_v12  ;;  %vm1662_vm2 = vcmp.ge.s32.totalorder %v1360_v28, 0  ;;  %vm1446_vm3 = vcmp.eq.s32.totalorder %v361_v43, 1  ;;  %s1059_s9 = scalar_lea.vmem %s1058_s8, 256 }
  0xe0   : > { %vm1438_vm8 = vmand %vm1377_vm7, %vm1662_vm2  ;;  %v571_v58 = vsel %vm570_vm11, 1, %v1127_v0  ;;  %vm1455_vm7 = vcmp.eq.s32.totalorder %v279_v46, 1  ;;  %vm1459_vm2 = vcmp.eq.s32.totalorder %v543_v47, 1  ;;  %vm1463_vm11 = vcmp.eq.s32.totalorder %v539_v51, 1  ;;  %p1056_p12 = pneg %p1055_p9  ;;  %p1061_p0 = scmp.lt.s32.totalorder %s1059_s9, %s1053_s30 }
  0xe1   : > { %v1674_v63 = vsel %vm1459_vm2, 4294967295, %v1673_v63  ;;  %vm499_vm4 = vmand %vm1438_vm8, %vm1651_vm9  ;;  %vm1471_vm6 = vcmp.eq.s32.totalorder %v464_v53, 1  ;;  %vm1475_vm2 = vcmp.eq.s32.totalorder %v468_v54, 1  ;;  %v575_v9 = vrot.slane %v571_v58, %v1344_v11 }
  0xe2   : > { %v579_v10 = vrot.slane %v571_v58, %v1346_v12  ;;  %vm1682_vm5 = vmmov %vm1681_vm13  ;;  %vm1683_vm9 = vcmask 605184   ;;  %v500_v22 = vsel %vm499_vm4, 1, %v1127_v0  ;;  %vm1688_vm4 = vcmask 596992   ;;  %p1062_p5 = por %p1061_p0, %p1060_p13 }
  0xe3   : > { %981 = vrot.lane.b32.xlu1 %v970_v26, %s1135_s14  ;;  %976 = vrot.lane.b32.xlu0 %v970_v26, %s1136_s28  ;;  %v508_v39 = vrot.slane %v500_v22, %v1346_v12  ;;  %v504_v47 = vrot.slane %v500_v22, %v1344_v11 }
  0xe4   : > { %p1063_p10 = pnand %p1062_p5, %p1056_p12 }
 0x144   : > { %v411_v41 = vpop.permute.xlu1 %410 }
 0x149   : > { %v952_v59 = vpop.permute.xlu1 %951  ;;  %v947_v60 = vpop.permute.xlu0 %946 }
 0x14a   : > { %v954_v2 = vunpack.i.h.bf16 %v952_v59  ;;  %v953_v3 = vunpack.i.l.bf16 %v952_v59  ;;  %v949_v4 = vunpack.i.h.bf16 %v947_v60  ;;  %v948_v5 = vunpack.i.l.bf16 %v947_v60 }
 0x14c   : > { %v414_v13 = vsel %vm1681_vm13, %v954_v2, %v411_v41  ;;  %v413_v14 = vsel %vm1682_vm5, %v953_v3, %v954_v2  ;;  %v333_v15 = vsel %vm1428_vm15, %v949_v4, 0.0  ;;  %v329_v16 = vsel %vm1683_vm9, %v948_v5, %v949_v4 }
 0x14d   : > { %v418_v17 = vsel %vm1419_vm10, %v414_v13, 0.0  ;;  %v417_v18 = vsel %vm1415_vm1, %v413_v14, 0.0  ;;  %v332_v19 = vsel %vm1423_vm14, %v329_v16, 0.0  ;;  %v962_v20 = vpop.permute.xlu1 %961  ;;  %v957_v21 = vpop.permute.xlu0 %956  ;;  %vm1684_vm13 = vcmask 1043458  }
 0x14e   : > { %v871_v23 = vpack.c.bf16 %v418_v17, %v417_v18  ;;  %v869_v25 = vpack.c.bf16 %v333_v15, %v332_v19  ;;  %v964_v26 = vunpack.i.h.bf16 %v962_v20  ;;  %v963_v27 = vunpack.i.l.bf16 %v962_v20  ;;  %v603_v20 = vld [vmem:[%s1611_s2] sm:$0x3] }
 0x14f   : > { %vm1685_vm15 = vcmask 556038   ;;  %v959_v29 = vunpack.i.h.bf16 %v957_v21  ;;  %v958_v30 = vunpack.i.l.bf16 %v957_v21  ;;  %vm588_vm1 = vcmask 924672  }
 0x150   : > { %vm1495_vm8 = vmor %vm1685_vm15, %vm1684_vm13  ;;  %vm517_vm10 = vcmask 941056   ;;  %v426_v31 = vrot.slane %v871_v23, 6  ;;  %v341_v32 = vrot.slane %v869_v25, 6  ;;  %v375_v33 = vsel %vm1446_vm3, %v964_v26, 0.0 }
 0x151   : > { %v371_v0 = vsel %vm1688_vm4, %v963_v27, %v964_v26  ;;  %v293_v35 = vsel %vm1455_vm7, %v959_v29, 0.0  ;;  %vm1689_vm14 = vcmask 613376   ;;  %v972_v37 = vpop.permute.xlu1 %971  ;;  %v967_v38 = vpop.permute.xlu0 %966  ;;  %vm1691_vm3 = vnez %v1674_v63 }
 0x152   : > { %v374_v34 = vsel %vm1442_vm12, %v371_v0, 0.0  ;;  %v289_v36 = vsel %vm1689_vm14, %v958_v30, %v959_v29  ;;  %428 = vst.msk [vmem:[#allocation3 + $0x8] sm:$0xcc] %vm1495_vm8, %v426_v31  ;;  %346 = vst.msk [vmem:[#allocation3] sm:$0xcc] %vm1495_vm8, %v341_v32  ;;  %v974_v42 = vunpack.i.h.bf16 %v972_v37  ;;  %v973_v43 = vunpack.i.l.bf16 %v972_v37 }
 0x153   : > { %v870_v40 = vpack.c.bf16 %v375_v33, %v374_v34  ;;  %v292_v41 = vsel %vm1451_vm0, %v289_v36, 0.0  ;;  %v969_v45 = vunpack.i.h.bf16 %v967_v38  ;;  %v968_v46 = vunpack.i.l.bf16 %v967_v38 }
 0x154   : > { %v868_v44 = vpack.c.bf16 %v293_v35, %v292_v41  ;;  %vm1690_vm12 = vnez %v1647_v24  ;;  %v557_v12 = vsel %vm1691_vm3, %v974_v42, 0.0  ;;  %vm1692_vm5 = vcmask 932864  }
 0x155   : > { %384 = vst.msk [vmem:[#allocation3 + $0x8] sm:$0x33] %vm1690_vm12, %v870_v40  ;;  %v553_v48 = vsel %vm1692_vm5, %v973_v43, %v974_v42  ;;  %vm1520_vm7 = vcmp.eq.s32.totalorder %v575_v9, 1  ;;  %vm1524_vm0 = vcmp.eq.s32.totalorder %v579_v10, 1  ;;  %v482_v51 = vsel %vm1475_vm2, %v969_v45, 0.0  ;;  %v982_v53 = vpop.permute.xlu1 %981  ;;  %v977_v54 = vpop.permute.xlu0 %976 }
 0x156   : > { %305 = vst.msk [vmem:[#allocation3] sm:$0x33] %vm1690_vm12, %v868_v44  ;;  %v556_v11 = vsel %vm1463_vm11, %v553_v48, 0.0  ;;  %vm1697_vm9 = vcmask 1039360   ;;  %vm510_vm13 = vcmp.eq.s32.totalorder %v508_v39, 1  ;;  %v984_v57 = vunpack.i.h.bf16 %v982_v53 }
 0x157   : > { %v478_v52 = vsel %vm1697_vm9, %v968_v46, %v969_v45  ;;  %v875_v55 = vpack.c.bf16 %v557_v12, %v556_v11  ;;  %v983_v58 = vunpack.i.l.bf16 %v982_v53  ;;  %vm509_vm15 = vcmp.eq.s32.totalorder %v504_v47, 1 }
 0x158   : > { %v481_v56 = vsel %vm1471_vm6, %v478_v52, 0.0  ;;  %v979_v60 = vunpack.i.h.bf16 %v977_v54  ;;  %v978_v61 = vunpack.i.l.bf16 %v977_v54  ;;  %v593_v63 = vsel %vm1524_vm0, %v984_v57, 0.0 }
 0x159   : > { %v873_v59 = vpack.c.bf16 %v482_v51, %v481_v56  ;;  %v565_v62 = vrot.slane %v875_v55, 6  ;;  %v589_v2 = vsel %vm588_vm1, %v983_v58, %v984_v57  ;;  %vm1698_vm6 = vcmask 1041408  }
 0x15a   : > { %v592_v4 = vsel %vm1520_vm7, %v589_v2, 0.0  ;;  %v522_v5 = vsel %vm510_vm13, %v979_v60, 0.0  ;;  %v518_v6 = vsel %vm517_vm10, %v978_v61, %v979_v60  ;;  %vm1699_vm2 = vmmov %vm1698_vm6  ;;  %vm634_vm11 = vcmask 293888  }
 0x15b   : > { %v490_v3 = vrot.slane %v873_v59, 6  ;;  %567 = vst.msk [vmem:[#allocation3 + $0x18] sm:$0xcc] %vm1495_vm8, %v565_v62  ;;  %v876_v7 = vpack.c.bf16 %v593_v63, %v592_v4  ;;  %v521_v8 = vsel %vm509_vm15, %v518_v6, 0.0  ;;  %vm1700_vm1 = vcmask 1043456  }
 0x15c   : > { %v874_v9 = vpack.c.bf16 %v522_v5, %v521_v8  ;;  %vm1701_vm10 = vmmov %vm1700_vm1  ;;  %vm1702_vm4 = vnez %v1643_v1 }
 0x15d   : > { %492 = vst.msk [vmem:[#allocation3 + $0x10] sm:$0xcc] %vm1495_vm8, %v490_v3  ;;  %v987_v10 = vld [vmem:[#allocation3 + $0x4] ss:$8 sps:$4 sm:$0xff]   ;;  %v989_v13 = vld [vmem:[#allocation3] ss:$8 sps:$4 sm:$0xff]  }
 0x15e   : > { %602 = vst.msk [vmem:[#allocation3 + $0x20] sm:$0x33] %vm1690_vm12, %v876_v7  ;;  %531 = vst.msk [vmem:[#allocation3 + $0x18] sm:$0x33] %vm1690_vm12, %v874_v9  ;;  %644 = vmatprep.subr.bf16.mxu0 %v987_v10  ;;  %vm691_vm8 = vcmask 551936  }
 0x15f   : > { %645 = vmatpush1.bf16.msra.mxu0 %v989_v13 }
 0x165   : > { %v608_v14 = vld [vmem:[#allocation3 + $0x20] sm:$0x33]  ;;  %v990_v15 = vld [vmem:[#allocation3 + $0x14] ss:$8 sps:$4 sm:$0xff]   ;;  %v992_v16 = vld [vmem:[#allocation3 + $0x10] ss:$8 sps:$4 sm:$0xff]  }
 0x166   : > { %v859_v17 = vcombine.high %v608_v14, %v608_v14  ;;  %646 = vmatprep.subr.bf16.mxu0 %v990_v15  ;;  %v858_v18 = vcombine.low %v608_v14, %v608_v14 }
 0x167   : > { %647 = vmatpush1.bf16.msra.mxu0 %v992_v16 }
 0x168   : > { %860 = vmatprep.subr.msk.bf16.mxu0 %vm1698_vm6, %v859_v17  ;;  %v639_v19 = vsel %vm1699_vm2, %v858_v18, 0 }
 0x16b   : > { %649 = vmatpush1.bf16.msra.mxu0 %v639_v19 }
 0x16e   : > { %861 = vmatmul.mubr.msk.bf16.vlgmr.msra.gmra.mrb[0].mxu0 %vm634_vm11, %v603_v20 }
 0x241   : > { %v678_v24 = vpop.f32.mrb[0].mxu0 }
 0x242   : > { %v698_v21 = vmul.f32 %v678_v24, %v678_v24  ;;  %v680_v22 = vpop.f32.mrb[1].mxu0  ;;  %v690_v23 = vsel %vm1700_vm1, %v678_v24, 0.0 }
 0x243   : > { %v687_v25 = vcombine.low %v678_v24, %v680_v22  ;;  %v699_v26 = vmul.f32 %v680_v22, %v680_v22  ;;  %v682_v27 = vpop.f32.mrb[2].mxu0  ;;  %v692_v28 = vsel %vm691_vm8, %v680_v22, 0.0 }
 0x244   : > { %v683_v29 = vpop.f32.mrb[3].mxu0  ;;  %v693_v30 = vadd.f32 %v692_v28, %v690_v23  ;;  %v700_v31 = vsel %vm1701_vm10, %v698_v21, 0.0 }
 0x245   : > { %v701_v32 = vsel %vm691_vm8, %v699_v26, 0.0  ;;  %689 = vst.msk [vmem:[%s227_s6] sm:$0xff] %vm1702_vm4, %v687_v25 }
 0x246   : > { %694 = vadd.xlane.f32.xlu0 %v693_v30  ;;  %v702_v33 = vadd.f32 %v701_v32, %v700_v31 }
 0x248   : > { %703 = vadd.xlane.f32.xlu1 %v702_v33 }
 0x249   : > { %1066 = shalt.err (!%p1063_p10)
}
 0x24a   : > { %s1067_s29 = scalar_lea.hbm %s1566_s21, 128  ;;  %s1071_s28 = scalar_lea.hbm %s1612_s3, 256 }
 0x24b   : > { %p1068_p1 = scmp.ne.s32.totalorder %s1566_s21, %s1067_s29  ;;  %p1072_p3 = scmp.lt.u32.totalorder %s1566_s21, %s1612_s3 }
 0x24c   : > { %p1073_p11 = scmp.lt.u32.totalorder %s1071_s28, %s1067_s29  ;;  %p1075_p6 = scmp.lt.u32.totalorder %s1067_s29, %s1566_s21 }
 0x24d   : > { %p1069_p2 = pnand %p1068_p1, %p1255_p8 }
 0x24e   : > { %p1074_p4 = por %p1073_p11, %p1072_p3 }
 0x24f   : > { %p1070_p7 = pneg %p1069_p2 }
 0x250   : > { %p1076_p9 = por %p1075_p6, %p1074_p4 }
 0x252   : > { %p1077_p12 = pnand %p1076_p9, %p1070_p7 }
 0x254   : > { %1080 = shalt.err (!%p1077_p12)
}
 0x255   : > { %884 = dma.vmem_to_hbm [thread:$0]  (%p1255_p8), %s727_s11, 128, %s1566_s21, %s708_s25   ;;  %vm696_vm14 = vcmask 3072   ;;  %vm705_vm12 = vcmask 11272  }
 0x256   : > { %p234_p13 = scmp.lt.s32.totalorder %s1184_s19, 1 }
 0x258   : > { %s1710_s19 = smov (!%p234_p13, %s1184_s19), 1 }
 0x259   : > { %s844_s6 = sshll.u32 %s1710_s19, 2 }
 0x25a   : > { %s237_s23 = scalar_lea.vmem %s1613_s4, %s844_s6 }
 0x2d3   : > { %v695_v1 = vpop.xlane.xlu0 %694 }
 0x2d4   : > { %697 = vst.msk [vmem:[%s237_s23] sm:$0xf] %vm696_vm14, %v695_v1 }
 0x2d5   : > { %v704_v0 = vpop.xlane.xlu1 %703 }
 0x2d6   : > { %706 = vst.msk [vmem:[%s237_s23] sm:$0xf] %vm705_vm12, %v704_v0 }
 0x2d7 PF: > { %s741_s24 = sand.u32 1, %s1111_s15   ;;  %p1703_p0 = scmp.ne.s32.totalorder %s1628_s22, 0 }
 0x2d8   : > { %p1704_p8 = scmp.ge.s32.totalorder %s1123_s18, 2  ;;  %s742_s11 = scalar_lea.sflag [#allocation6], %s741_s24 }
 0x2da   : > { %p895_p5 = pnand %p1704_p8, %p1703_p0 }
 0x2dc   : > { %1106 = dma.done.wait (!%p895_p5), %s742_s11, 128  }
 0x2dd   : > { %1108 = vsyncadd (!%p895_p5), %s742_s11, 4294967168  ;;  %p19_p10 = scmp.ge.s32.totalorder %s1211_s26, 4   ;;  %s1705_s15 = smov %s1115_s16 }
 0x2de   : > { %s1706_s16 = smov %s1119_s17  ;;  %s1707_s17 = smov %s1247_s20 }
 0x2df   : > { %s1708_s18 = smov %s1211_s26  ;;  %21 = sbr.rel (!%p19_p10) target bundleno = 6 (0x6), region = 94 }
 0x2e6   :  { %754 = vsyncpa [#allocation5], 1 }
 0x2e7   :  { %756 = vsyncpa [#allocation5 + $0x1], 1 }
 0x2e8   :  { %757 = vsyncpa [#allocation8], 1 }
 0x2e9   :  { %758 = vsyncpa [#allocation6], 1 }
 0x2ea   :  { %760 = vsyncpa [#allocation6 + $0x1], 1 }

</bundles_post_ra>
